<compile_context>
chip_gen: v7x
topology: tpu7x:2x2x1
jax: 0.10.0
libtpu: 0.0.40
codegen_flags: <defaults>
</compile_context>

<pallas_src>
import functools
import math

import jax
import jax.numpy as jnp
from jax.experimental import pallas as pl
from jax.experimental.pallas import tpu as pltpu


def v_mlp_kernel(x_ref, w1_ref, b1_ref, w2_ref, b2_ref,
                 w3_ref, b3_ref, w4_ref, b4_ref, o_ref):
    """Fused IQL V-network MLP, transposed dataflow (batch on lanes).

    Weights are PyTorch-native (out, in); activations are (hidden, blk).  MXU
    matmuls run in the weights' dtype (f32 or bf16) with f32 accumulation;
    bias-add / ReLU stay in f32 on the VPU.
    """
    cdt = w1_ref.dtype                                   # MXU compute dtype

    # One cheap XLU transpose of the (blk, D) obs tile -> (D, blk); keeps obs in
    # its natural HBM layout (no extra wrapper-side transpose pass over HBM).
    x_t = x_ref[...].T.astype(cdt)                       # (D, blk)

    h = jnp.dot(w1_ref[...], x_t,
                preferred_element_type=jnp.float32) + b1_ref[...]   # (128, blk)
    h = jnp.maximum(h, 0.0)
    h = jnp.dot(w2_ref[...], h.astype(cdt),
                preferred_element_type=jnp.float32) + b2_ref[...]   # (64, blk)
    h = jnp.maximum(h, 0.0)
    h = jnp.dot(w3_ref[...], h.astype(cdt),
                preferred_element_type=jnp.float32) + b3_ref[...]   # (32, blk)
    h = jnp.maximum(h, 0.0)
    o = jnp.dot(w4_ref[...], h.astype(cdt),
                preferred_element_type=jnp.float32) + b4_ref[...]   # (1, blk)
    o_ref[...] = o                                        # lane-dense row store


def _round_up(x, m):
    return ((x + m - 1) // m) * m


@functools.partial(jax.jit, static_argnames=("block_b",))
def v_forward(obs, params, block_b=2048):
    """obs: (B, dim_observation) f32.  Returns (B, 1) f32.

    block_b: batch rows (lanes) per grid step.  Kept a multiple of 128 when
    tiling; 1024-4096 is a good sweep range — per-tile VMEM is only ~1.5 MiB per
    1024 rows, so even v7x's smaller VMEM is not a constraint at these sizes.
    """
    (w1, b1), (w2, b2), (w3, b3), (w4, b4) = params
    B, D = obs.shape
    H1, H2, H3 = w1.shape[0], w2.shape[0], w3.shape[0]

    if B <= block_b:
        if B >= 256:
            # >= 2 tiles so both of v7x's TensorCores get work; one extra grid
            # step (~0.35 us) is negligible.  Free on single-TC v5e/v6e.
            blk = _round_up(pl.cdiv(B, 2), 128)
        else:
            blk = B                      # single block == full batch dims
    else:
        blk = max(128, (min(block_b, B) // 128) * 128)   # lane-aligned tile
    num_tiles = pl.cdiv(B, blk)          # at most one masked partial trailing block

    flops = 2 * B * (D * H1 + H1 * H2 + H2 * H3 + H3 * 1)
    weight_bytes = sum(int(a.size) * a.dtype.itemsize
                       for (w, bb) in params for a in (w, bb))
    cost = pl.CostEstimate(
        flops=flops,
        transcendentals=0,
        bytes_accessed=(int(obs.size) * obs.dtype.itemsize
                        + num_tiles * blk * 4          # padded output slab
                        + weight_bytes))

    const = lambda i: (0, 0)   # weights/biases: resident block, re-copy elided

    out = pl.pallas_call(
        v_mlp_kernel,
        out_shape=jax.ShapeDtypeStruct((1, num_tiles * blk), jnp.float32),
        grid_spec=pltpu.PrefetchScalarGridSpec(
            num_scalar_prefetch=0,
            grid=(num_tiles,),
            in_specs=[
                pl.BlockSpec((blk, D), lambda i: (i, 0)),   # obs tile (blk, D)
                pl.BlockSpec(w1.shape, const),              # FC1 W (128, D)
                pl.BlockSpec(b1.shape, const),              # FC1 b (128, 1)
                pl.BlockSpec(w2.shape, const),              # FC2 W (64, 128)
                pl.BlockSpec(b2.shape, const),              # FC2 b (64, 1)
                pl.BlockSpec(w3.shape, const),              # FC3 W (32, 64)
                pl.BlockSpec(b3.shape, const),              # FC3 b (32, 1)
                pl.BlockSpec(w4.shape, const),              # FC4 W (1, 32)
                pl.BlockSpec(b4.shape, const),              # FC4 b (1, 1)
            ],
            out_specs=pl.BlockSpec((1, blk), lambda i: (0, i)),
        ),
        compiler_params=pltpu.CompilerParams(
            dimension_semantics=("parallel",)),             # megacore/v7x sharding
        cost_estimate=cost,
    )(obs, w1, b1, w2, b2, w3, b3, w4, b4)

    # (1, num_tiles*blk) lane-dense slab -> (B, 1) column; drops tail-block garbage
    # (column-local: no cross-batch ops inside the kernel, so it can never
    # contaminate valid rows even if the masked tail contains NaN/Inf bits).
    return out.reshape(-1)[:B].reshape(B, 1)


def cast_params_for_mxu(params, dtype=jnp.bfloat16):
    """Cast weight matrices (not biases) to `dtype` for the fast MXU path.

    Recommended on ALL TPU generations (v5e's MXU is bf16-native too); the kernel
    keeps f32 accumulation and f32 elementwise (ReLU/bias).  Note that on this
    path activations are also cast to bf16 before each matmul inside the kernel.
    """
    return [(w.astype(dtype), b) for (w, b) in params]


def init_params(key, dim_observation):
    """Deterministic init mimicking PyTorch nn.Linear default:
    U(-1/sqrt(fan_in), 1/sqrt(fan_in)) for both W and b.
    Weights stored PyTorch-native (out_features, in_features);
    biases stored as (out_features, 1) columns (broadcast across lanes)."""
    sizes = [(dim_observation, 128), (128, 64), (64, 32), (32, 1)]
    params = []
    for (fan_in, fan_out) in sizes:
        key, kw, kb = jax.random.split(key, 3)
        bound = 1.0 / math.sqrt(fan_in)
        w = jax.random.uniform(kw, (fan_out, fan_in), jnp.float32, -bound, bound)
        b = jax.random.uniform(kb, (fan_out, 1), jnp.float32, -bound, bound)
        params.append((w, b))
    return params


def v_forward_ref(obs, params):
    """Pure-JAX reference of the PyTorch forward, for correctness check."""
    h = obs
    for i, (w, b) in enumerate(params):
        h = h @ w.astype(jnp.float32).T + b.astype(jnp.float32).reshape(1, -1)
        if i < len(params) - 1:
            h = jnp.maximum(h, 0.0)
    return h


if __name__ == "__main__":
    key = jax.random.PRNGKey(0)
    dim_observation = 16

    kp, kx1, kx2, kx3 = jax.random.split(key, 4)
    params = init_params(kp, dim_observation)

    # Case 1: small batch, single full block (blk == B, no tiling constraints).
    obs8 = jax.random.normal(kx1, (8, dim_observation), jnp.float32)
    out8 = v_forward(obs8, params)
    jax.block_until_ready(out8)
    ref8 = v_forward_ref(obs8, params)
    assert out8.shape == (8, 1), out8.shape
    assert jnp.allclose(out8, ref8, atol=1e-4, rtol=1e-4), "f32 mismatch (case 1)"

    # Case 2: multi-tile grid with a masked partial trailing block (no jnp.pad).
    obs300 = jax.random.normal(kx2, (300, dim_observation), jnp.float32)
    out300 = v_forward(obs300, params, block_b=128)       # 3 tiles, last one partial
    jax.block_until_ready(out300)
    ref300 = v_forward_ref(obs300, params)
    assert out300.shape == (300, 1), out300.shape
    assert jnp.allclose(out300, ref300, atol=1e-4, rtol=1e-4), "f32 mismatch (case 2)"

    # Case 3: bf16 weights on the MXU (all generations incl. v5e), f32 accumulation.
    params_bf16 = cast_params_for_mxu(params, jnp.bfloat16)
    out_bf16 = v_forward(obs300, params_bf16, block_b=128)
    jax.block_until_ready(out_bf16)
    assert jnp.allclose(out_bf16, ref300, atol=2e-2, rtol=2e-2), "bf16 mismatch"

    # Case 4: batch >= 256 fitting one block -> split into 2 tiles (v7x dual-TC path).
    obs512 = jax.random.normal(kx3, (512, dim_observation), jnp.float32)
    out512 = v_forward(obs512, params)                    # default block_b, 2 tiles
    jax.block_until_ready(out512)
    ref512 = v_forward_ref(obs512, params)
    assert out512.shape == (512, 1), out512.shape
    assert jnp.allclose(out512, ref512, atol=1e-4, rtol=1e-4), "f32 mismatch (case 4)"

    print("KERNEL_OK")
</pallas_src>

<mosaic_0001>
module attributes {stable_mosaic.version = 11 : i64} {
  func.func @v_mlp_kernel(%arg0: i32, %arg1: memref<8x16xf32, #tpu.memory_space<vmem>>, %arg2: memref<128x16xf32, #tpu.memory_space<vmem>>, %arg3: memref<128x1xf32, #tpu.memory_space<vmem>>, %arg4: memref<64x128xf32, #tpu.memory_space<vmem>>, %arg5: memref<64x1xf32, #tpu.memory_space<vmem>>, %arg6: memref<32x64xf32, #tpu.memory_space<vmem>>, %arg7: memref<32x1xf32, #tpu.memory_space<vmem>>, %arg8: memref<1x32xf32, #tpu.memory_space<vmem>>, %arg9: memref<1x1xf32, #tpu.memory_space<vmem>>, %arg10: memref<1x8xf32, #tpu.memory_space<vmem>>) attributes {dimension_semantics = [#tpu.dimension_semantics<parallel>], iteration_bounds = array<i64: 1>, scalar_prefetch = 0 : i64, scratch_operands = 0 : i64, tpu.core_type = #tpu.core_type<tc>, window_params = [{transform_indices = @transform_0, window_bounds = array<i64: 8, 16>}, {pipeline_mode = #tpu.pipeline_mode<synchronous>, transform_indices = @transform_1, window_bounds = array<i64: 128, 16>}, {pipeline_mode = #tpu.pipeline_mode<synchronous>, transform_indices = @transform_2, window_bounds = array<i64: 128, 1>}, {pipeline_mode = #tpu.pipeline_mode<synchronous>, transform_indices = @transform_3, window_bounds = array<i64: 64, 128>}, {pipeline_mode = #tpu.pipeline_mode<synchronous>, transform_indices = @transform_4, window_bounds = array<i64: 64, 1>}, {pipeline_mode = #tpu.pipeline_mode<synchronous>, transform_indices = @transform_5, window_bounds = array<i64: 32, 64>}, {pipeline_mode = #tpu.pipeline_mode<synchronous>, transform_indices = @transform_6, window_bounds = array<i64: 32, 1>}, {pipeline_mode = #tpu.pipeline_mode<synchronous>, transform_indices = @transform_7, window_bounds = array<i64: 1, 32>}, {pipeline_mode = #tpu.pipeline_mode<synchronous>, transform_indices = @transform_8, window_bounds = array<i64: 1, 1>}, {transform_indices = @transform_9, window_bounds = array<i64: 1, 8>}]} {
    %c0 = arith.constant 0 : index
    %c0_0 = arith.constant 0 : index
    %0 = vector.load %arg1[%c0, %c0_0] : memref<8x16xf32, #tpu.memory_space<vmem>>, vector<8x16xf32>
    %1 = tpu.transpose %0, [1, 0] : vector<8x16xf32> -> vector<16x8xf32>
    %c0_1 = arith.constant 0 : index
    %c0_2 = arith.constant 0 : index
    %2 = vector.load %arg2[%c0_1, %c0_2] : memref<128x16xf32, #tpu.memory_space<vmem>>, vector<128x16xf32>
    %cst = arith.constant dense<0.000000e+00> : vector<128x8xf32>
    %3 = tpu.matmul %2, %1, %cst {dimension_numbers = #tpu.dot_dimension_numbers<[1], [0], [0], [1], [0, 0, 1, 1], [], []>} : vector<128x16xf32>, vector<16x8xf32>, vector<128x8xf32> -> vector<128x8xf32>
    %c0_3 = arith.constant 0 : index
    %c0_4 = arith.constant 0 : index
    %4 = vector.load %arg3[%c0_3, %c0_4] : memref<128x1xf32, #tpu.memory_space<vmem>>, vector<128x1xf32>
    %5 = vector.broadcast %4 : vector<128x1xf32> to vector<128x8xf32>
    %6 = arith.addf %3, %5 : vector<128x8xf32>
    %cst_5 = arith.constant 0.000000e+00 : f32
    %7 = vector.broadcast %cst_5 : f32 to vector<128x8xf32>
    %8 = arith.maximumf %6, %7 : vector<128x8xf32>
    %c0_6 = arith.constant 0 : index
    %c0_7 = arith.constant 0 : index
    %9 = vector.load %arg4[%c0_6, %c0_7] : memref<64x128xf32, #tpu.memory_space<vmem>>, vector<64x128xf32>
    %cst_8 = arith.constant dense<0.000000e+00> : vector<64x8xf32>
    %10 = tpu.matmul %9, %8, %cst_8 {dimension_numbers = #tpu.dot_dimension_numbers<[1], [0], [0], [1], [0, 0, 1, 1], [], []>} : vector<64x128xf32>, vector<128x8xf32>, vector<64x8xf32> -> vector<64x8xf32>
    %c0_9 = arith.constant 0 : index
    %c0_10 = arith.constant 0 : index
    %11 = vector.load %arg5[%c0_9, %c0_10] : memref<64x1xf32, #tpu.memory_space<vmem>>, vector<64x1xf32>
    %12 = vector.broadcast %11 : vector<64x1xf32> to vector<64x8xf32>
    %13 = arith.addf %10, %12 : vector<64x8xf32>
    %cst_11 = arith.constant 0.000000e+00 : f32
    %14 = vector.broadcast %cst_11 : f32 to vector<64x8xf32>
    %15 = arith.maximumf %13, %14 : vector<64x8xf32>
    %c0_12 = arith.constant 0 : index
    %c0_13 = arith.constant 0 : index
    %16 = vector.load %arg6[%c0_12, %c0_13] : memref<32x64xf32, #tpu.memory_space<vmem>>, vector<32x64xf32>
    %cst_14 = arith.constant dense<0.000000e+00> : vector<32x8xf32>
    %17 = tpu.matmul %16, %15, %cst_14 {dimension_numbers = #tpu.dot_dimension_numbers<[1], [0], [0], [1], [0, 0, 1, 1], [], []>} : vector<32x64xf32>, vector<64x8xf32>, vector<32x8xf32> -> vector<32x8xf32>
    %c0_15 = arith.constant 0 : index
    %c0_16 = arith.constant 0 : index
    %18 = vector.load %arg7[%c0_15, %c0_16] : memref<32x1xf32, #tpu.memory_space<vmem>>, vector<32x1xf32>
    %19 = vector.broadcast %18 : vector<32x1xf32> to vector<32x8xf32>
    %20 = arith.addf %17, %19 : vector<32x8xf32>
    %cst_17 = arith.constant 0.000000e+00 : f32
    %21 = vector.broadcast %cst_17 : f32 to vector<32x8xf32>
    %22 = arith.maximumf %20, %21 : vector<32x8xf32>
    %c0_18 = arith.constant 0 : index
    %c0_19 = arith.constant 0 : index
    %23 = vector.load %arg8[%c0_18, %c0_19] : memref<1x32xf32, #tpu.memory_space<vmem>>, vector<1x32xf32>
    %cst_20 = arith.constant dense<0.000000e+00> : vector<1x8xf32>
    %24 = tpu.matmul %23, %22, %cst_20 {dimension_numbers = #tpu.dot_dimension_numbers<[1], [0], [0], [1], [0, 0, 1, 1], [], []>} : vector<1x32xf32>, vector<32x8xf32>, vector<1x8xf32> -> vector<1x8xf32>
    %c0_21 = arith.constant 0 : index
    %c0_22 = arith.constant 0 : index
    %25 = vector.load %arg9[%c0_21, %c0_22] : memref<1x1xf32, #tpu.memory_space<vmem>>, vector<1x1xf32>
    %26 = vector.broadcast %25 : vector<1x1xf32> to vector<1x8xf32>
    %27 = arith.addf %24, %26 : vector<1x8xf32>
    %c0_23 = arith.constant 0 : index
    %c0_24 = arith.constant 0 : index
    %28 = vector.load %arg10[%c0_23, %c0_24] : memref<1x8xf32, #tpu.memory_space<vmem>>, vector<1x8xf32>
    tpu.vector_store %arg10[%c0_23, %c0_24], %27 {strides = array<i32>} : memref<1x8xf32, #tpu.memory_space<vmem>>, vector<1x8xf32>,
    return
  }
  func.func @transform_0(%arg0: i32) -> (i32, i32) {
    %c0_i32 = arith.constant 0 : i32
    %c0_i32_0 = arith.constant 0 : i32
    return %arg0, %c0_i32 : i32, i32
  }
  func.func @transform_1(%arg0: i32) -> (i32, i32) {
    %c0_i32 = arith.constant 0 : i32
    %c0_i32_0 = arith.constant 0 : i32
    %c0_i32_1 = arith.constant 0 : i32
    return %c0_i32, %c0_i32_0 : i32, i32
  }
  func.func @transform_2(%arg0: i32) -> (i32, i32) {
    %c0_i32 = arith.constant 0 : i32
    %c0_i32_0 = arith.constant 0 : i32
    %c0_i32_1 = arith.constant 0 : i32
    return %c0_i32, %c0_i32_0 : i32, i32
  }
  func.func @transform_3(%arg0: i32) -> (i32, i32) {
    %c0_i32 = arith.constant 0 : i32
    %c0_i32_0 = arith.constant 0 : i32
    %c0_i32_1 = arith.constant 0 : i32
    return %c0_i32, %c0_i32_0 : i32, i32
  }
  func.func @transform_4(%arg0: i32) -> (i32, i32) {
    %c0_i32 = arith.constant 0 : i32
    %c0_i32_0 = arith.constant 0 : i32
    %c0_i32_1 = arith.constant 0 : i32
    return %c0_i32, %c0_i32_0 : i32, i32
  }
  func.func @transform_5(%arg0: i32) -> (i32, i32) {
    %c0_i32 = arith.constant 0 : i32
    %c0_i32_0 = arith.constant 0 : i32
    %c0_i32_1 = arith.constant 0 : i32
    return %c0_i32, %c0_i32_0 : i32, i32
  }
  func.func @transform_6(%arg0: i32) -> (i32, i32) {
    %c0_i32 = arith.constant 0 : i32
    %c0_i32_0 = arith.constant 0 : i32
    %c0_i32_1 = arith.constant 0 : i32
    return %c0_i32, %c0_i32_0 : i32, i32
  }
  func.func @transform_7(%arg0: i32) -> (i32, i32) {
    %c0_i32 = arith.constant 0 : i32
    %c0_i32_0 = arith.constant 0 : i32
    %c0_i32_1 = arith.constant 0 : i32
    return %c0_i32, %c0_i32_0 : i32, i32
  }
  func.func @transform_8(%arg0: i32) -> (i32, i32) {
    %c0_i32 = arith.constant 0 : i32
    %c0_i32_0 = arith.constant 0 : i32
    %c0_i32_1 = arith.constant 0 : i32
    return %c0_i32, %c0_i32_0 : i32, i32
  }
  func.func @transform_9(%arg0: i32) -> (i32, i32) {
    %c0_i32 = arith.constant 0 : i32
    %c0_i32_0 = arith.constant 0 : i32
    return %c0_i32, %arg0 : i32, i32
  }
}

</mosaic_0001>

<bundles_post_ra>
// kernel: v_forward.1
= control target key start
LH: loop header
LB: loop body
LE: loop exit
PB: predicated region body
PF: predicated region fallthrough
CT: control target
= control target key end

     0   :  { %s1295_s0 = inlined_call_operand.vmem [shape: f32[8,16], index: 0, kind: input, shape index: {}]   ;;  %s1296_s1 = inlined_call_operand.vmem [shape: f32[128,16], index: 1, kind: input, shape index: {}]   ;;  %s1297_s2 = inlined_call_operand.vmem [shape: f32[128,1], index: 2, kind: input, shape index: {}]   ;;  %s1298_s3 = inlined_call_operand.vmem [shape: f32[64,128], index: 3, kind: input, shape index: {}]   ;;  %s1299_s4 = inlined_call_operand.vmem [shape: f32[64,1], index: 4, kind: input, shape index: {}]   ;;  %s1300_s5 = inlined_call_operand.vmem [shape: f32[32,64], index: 5, kind: input, shape index: {}]   ;;  %s1301_s6 = inlined_call_operand.vmem [shape: f32[32,1], index: 6, kind: input, shape index: {}]   ;;  %s1302_s7 = inlined_call_operand.vmem [shape: f32[1,32], index: 7, kind: input, shape index: {}]   ;;  %s1303_s8 = inlined_call_operand.<no memory space> [shape: f32[1,1], index: 8, kind: input, shape index: {}]   ;;  %s1304_s9 = inlined_call_operand.hbm [shape: f32[1,8], index: 9, kind: output, shape index: {}]  }
   0x1   :  { %v14_v0 = vstv %s1303_s8 }
   0x2   :  { %15 = vst [vmem:[#allocation2] sm:$0x1] %v14_v0 }
   0x3   :  { %v35_v1 = vld [vmem:[%s1295_s0] sm:$0xff]  ;;  %vm148_vm0 = vcmask 130048   ;;  %v37_v3 = vld [vmem:[%s1296_s1 + $0x8] sm:$0xff]  ;;  %v1029_v4 = vmov 0   ;;  %v38_v5 = vld [vmem:[%s1296_s1 + $0x10] sm:$0xff] }
   0x4   :  { %v36_v2 = vld [vmem:[%s1296_s1] sm:$0xff]  ;;  %841 = vmatprep.subr.msk.mxu0 %vm148_vm0, %v35_v1  ;;  %1003 = vset.pattern.permute.xlu0 %v1029_v4  ;;  %v39_v7 = vld [vmem:[%s1296_s1 + $0x18] sm:$0xff]  ;;  %v54_v8 = vld [vmem:[%s1297_s2 + $0x10] sm:$0xff] }
   0x5   :  { %843 = vmatprep.mubr.msk.f32.mxu0 %vm148_vm0, %v36_v2  ;;  %842 = vmatpush3.xpose.msk.msra.mxu0 %vm148_vm0, %v35_v1  ;;  %v52_v6 = vld [vmem:[%s1297_s2] sm:$0xff]  ;;  %v53_v10 = vld [vmem:[%s1297_s2 + $0x8] sm:$0xff]  ;;  %v55_v11 = vld [vmem:[%s1297_s2 + $0x18] sm:$0xff] }
   0x6   :  { %1004 = vset.pattern.permute.xlu1 %v1029_v4  ;;  %70 = vperm.xlu0 %1003, %v52_v6   ;;  %v40_v9 = vld [vmem:[%s1296_s1 + $0x20] sm:$0xff]  ;;  %v41_v12 = vld [vmem:[%s1296_s1 + $0x28] sm:$0xff]  ;;  %v42_v13 = vld [vmem:[%s1296_s1 + $0x30] sm:$0xff] }
   0x7   :  { %80 = vperm.xlu1 %1004, %v54_v8   ;;  %v56_v14 = vld [vmem:[%s1297_s2 + $0x20] sm:$0xff]  ;;  %v57_v15 = vld [vmem:[%s1297_s2 + $0x28] sm:$0xff]  ;;  %v43_v16 = vld [vmem:[%s1296_s1 + $0x38] sm:$0xff] }
   0x8   :  { %844 = vmatmul.mubr.msk.f32.vlgmr.msra.gmra.mrb[0].mxu0 %vm148_vm0, %v37_v3  ;;  %v44_v17 = vld [vmem:[%s1296_s1 + $0x40] sm:$0xff]  ;;  %v58_v18 = vld [vmem:[%s1297_s2 + $0x30] sm:$0xff] }
   0x9   :  { %846 = vmatprep.mubr.msk.f32.mxu0 %vm148_vm0, %v38_v5 }
   0xa   :  { %75 = vperm.xlu0 %1003, %v53_v10  }
   0xb   :  { %85 = vperm.xlu1 %1004, %v55_v11  }
   0xc   :  { %847 = vmatmul.mubr.msk.f32.gmra.mrb[2].mxu0 %vm148_vm0, %v39_v7 }
   0xd   :  { %849 = vmatprep.mubr.msk.f32.mxu0 %vm148_vm0, %v40_v9 }
   0xe   :  { %90 = vperm.xlu0 %1003, %v56_v14  }
   0xf   :  { %95 = vperm.xlu1 %1004, %v57_v15  }
  0x10   :  { %850 = vmatmul.mubr.msk.f32.gmra.mrb[4].mxu0 %vm148_vm0, %v41_v12 }
  0x11   :  { %852 = vmatprep.mubr.msk.f32.mxu0 %vm148_vm0, %v42_v13 }
  0x12   :  { %16 = vsyncpa [#allocation4], 0  ;;  %v59_v19 = vld [vmem:[%s1297_s2 + $0x38] sm:$0xff]  ;;  %v45_v20 = vld [vmem:[%s1296_s1 + $0x48] sm:$0xff]  ;;  %100 = vperm.xlu0 %1003, %v58_v18   ;;  %vm558_vm1 = vcmask 523264   ;;  %vm1031_vm2 = vmmov 0  }
  0x13   :  { %v46_v21 = vld [vmem:[%s1296_s1 + $0x50] sm:$0xff]  ;;  %v60_v22 = vld [vmem:[%s1297_s2 + $0x40] sm:$0xff]  ;;  %105 = vperm.xlu1 %1004, %v59_v19   ;;  %v61_v23 = vld [vmem:[%s1297_s2 + $0x48] sm:$0xff]  ;;  %vm671_vm3 = vcmask 261120   ;;  %s1033_s25 = smov [#allocation3]   ;;  %vm745_vm4 = vcmask 57344  }
  0x14   :  { %853 = vmatmul.mubr.msk.f32.gmra.mrb[6].mxu0 %vm148_vm0, %v43_v16  ;;  %v47_v24 = vld [vmem:[%s1296_s1 + $0x58] sm:$0xff]  ;;  %v48_v25 = vld [vmem:[%s1296_s1 + $0x60] sm:$0xff]  ;;  %v62_v26 = vld [vmem:[%s1297_s2 + $0x50] sm:$0xff]  ;;  %s753_s26 = sshll.u32 %s1033_s25, 4  ;;  %s754_s26 = int_to_ptr.vmem [resolvable:$true] %s753_s26 }
  0x15   :  { %855 = vmatprep.mubr.msk.f32.mxu0 %vm148_vm0, %v44_v17  ;;  %v63_v27 = vld [vmem:[%s1297_s2 + $0x58] sm:$0xff]  ;;  %v49_v28 = vld [vmem:[%s1296_s1 + $0x68] sm:$0xff]  ;;  %v50_v29 = vld [vmem:[%s1296_s1 + $0x70] sm:$0xff]  ;;  %s1005_s27 = scalar_lea.vmem %s754_s26, 16  ;;  %p1010_p1 = scmp.lt.s32.totalorder %s754_s26, %s754_s26 }
  0x16   :  { %110 = vperm.xlu0 %1003, %v60_v22   ;;  %v64_v30 = vld [vmem:[%s1297_s2 + $0x60] sm:$0xff]  ;;  %v65_v31 = vld [vmem:[%s1297_s2 + $0x68] sm:$0xff]  ;;  %v51_v32 = vld [vmem:[%s1296_s1 + $0x78] sm:$0xff]  ;;  %p1006_p0 = scmp.ne.s32.totalorder %s754_s26, %s1005_s27 }
  0x17   :  { %115 = vperm.xlu1 %1004, %v61_v23   ;;  %v66_v33 = vld [vmem:[%s1297_s2 + $0x70] sm:$0xff]  ;;  %v67_v34 = vld [vmem:[%s1297_s2 + $0x78] sm:$0xff]  ;;  %v369_v35 = vld [vmem:[%s1299_s4] sm:$0xff] }
  0x18   :  { %856 = vmatmul.mubr.msk.f32.gmra.mrb[8].mxu0 %vm148_vm0, %v45_v20  ;;  %v370_v36 = vld [vmem:[%s1299_s4 + $0x8] sm:$0xff]  ;;  %v371_v37 = vld [vmem:[%s1299_s4 + $0x10] sm:$0xff]  ;;  %v372_v38 = vld [vmem:[%s1299_s4 + $0x18] sm:$0xff] }
  0x19   :  { %858 = vmatprep.mubr.msk.f32.mxu0 %vm148_vm0, %v46_v21  ;;  %v373_v39 = vld [vmem:[%s1299_s4 + $0x20] sm:$0xff]  ;;  %v374_v40 = vld [vmem:[%s1299_s4 + $0x28] sm:$0xff]  ;;  %v375_v41 = vld [vmem:[%s1299_s4 + $0x30] sm:$0xff] }
  0x1a   :  { %120 = vperm.xlu0 %1003, %v62_v26   ;;  %v376_v42 = vld [vmem:[%s1299_s4 + $0x38] sm:$0xff]  ;;  %v534_v43 = vld [vmem:[%s1301_s6] sm:$0xff]  ;;  %v535_v44 = vld [vmem:[%s1301_s6 + $0x8] sm:$0xff]  ;;  %s1009_s4 = scalar_lea.vmem %s754_s26, 32 }
  0x1b   :  { %125 = vperm.xlu1 %1004, %v63_v27   ;;  %v536_v45 = vld [vmem:[%s1301_s6 + $0x10] sm:$0xff]  ;;  %v537_v46 = vld [vmem:[%s1301_s6 + $0x18] sm:$0xff]  ;;  %v661_v47 = vld [vmem:[#allocation2] sm:$0x1]  ;;  %p1011_p2 = scmp.lt.s32.totalorder %s1009_s4, %s1005_s27 }
  0x1c   :  { %859 = vmatmul.mubr.msk.f32.gmra.mrb[10].mxu0 %vm148_vm0, %v47_v24  ;;  %v361_v48 = vld [vmem:[%s1298_s3] sm:$0xff] }
  0x1d   :  { %861 = vmatprep.mubr.msk.f32.mxu0 %vm148_vm0, %v48_v25  ;;  %899 = vmatprep.mubr.f32.mxu1 %v361_v48  ;;  %p1012_p3 = por %p1011_p2, %p1010_p1 }
  0x1e   :  { %130 = vperm.xlu0 %1003, %v64_v30  }
  0x1f   :  { %135 = vperm.xlu1 %1004, %v65_v31   ;;  %p1013_p4 = pnand %p1012_p3, %p1006_p0 }
  0x20   :  { %862 = vmatmul.mubr.msk.f32.gmra.mrb[12].mxu0 %vm148_vm0, %v49_v28 }
  0x21   :  { %864 = vmatprep.mubr.msk.f32.mxu0 %vm148_vm0, %v50_v29 }
  0x22   :  { %140 = vperm.xlu0 %1003, %v66_v33  }
  0x23   :  { %145 = vperm.xlu1 %1004, %v67_v34  }
  0x24   :  { %865 = vmatmul.mubr.msk.f32.gmra.mrb[14].mxu0 %vm148_vm0, %v51_v32 }
  0x26   :  { %379 = vperm.xlu0 %1003, %v369_v35  }
  0x27   :  { %384 = vperm.xlu1 %1004, %v370_v36  }
  0x2a   :  { %389 = vperm.xlu0 %1003, %v371_v37  }
  0x2b   :  { %394 = vperm.xlu1 %1004, %v372_v38  }
  0x2e   :  { %399 = vperm.xlu0 %1003, %v373_v39  }
  0x2f   :  { %404 = vperm.xlu1 %1004, %v374_v40  }
  0x32   :  { %409 = vperm.xlu0 %1003, %v375_v41  }
  0x33   :  { %414 = vperm.xlu1 %1004, %v376_v42  }
  0x36   :  { %540 = vperm.xlu0 %1003, %v534_v43  }
  0x37   :  { %545 = vperm.xlu1 %1004, %v535_v44  }
  0x3a   :  { %550 = vperm.xlu0 %1003, %v536_v45  }
  0x3b   :  { %555 = vperm.xlu1 %1004, %v537_v46  }
  0x3e   :  { %664 = vperm.xlu0 %1003, %v661_v47  }
  0x85   :  { %v71_v50 = vpop.permute.xlu0 %70 }
  0x86   :  { %v81_v49 = vpop.permute.xlu1 %80 }
  0x89   :  { %v76_v52 = vpop.permute.xlu0 %75 }
  0x8a   :  { %v86_v51 = vpop.permute.xlu1 %85 }
  0x8d   :  { %v91_v54 = vpop.permute.xlu0 %90 }
  0x8e   :  { %v96_v53 = vpop.permute.xlu1 %95 }
  0x91   :  { %v101_v63 = vpop.permute.xlu0 %100 }
  0x92   :  { %v106_v60 = vpop.permute.xlu1 %105 }
  0x95   :  { %v111_v12 = vpop.permute.xlu0 %110 }
  0x96   :  { %v116_v9 = vpop.permute.xlu1 %115 }
  0x99   :  { %v121_v24 = vpop.permute.xlu0 %120 }
  0x9a   :  { %v126_v21 = vpop.permute.xlu1 %125 }
  0x9d   :  { %v131_v37 = vpop.permute.xlu0 %130 }
  0x9e   :  { %v136_v34 = vpop.permute.xlu1 %135 }
  0xa2   :  { %v146_v46 = vpop.permute.xlu1 %145 }
  0xdb   :  { %v845_v55 = vpop.f32.mrb[0].mxu0 }
  0xdc   :  { %v272_v56 = vadd.f32 %v845_v55, %v76_v52  ;;  %v266_v57 = vpop.f32.mrb[1].mxu0 }
  0xdd   :  { %v267_v58 = vadd.f32 %v266_v57, %v71_v50  ;;  %v362_v57 = vld [vmem:[%s1298_s3 + $0x8] sm:$0xff] }
  0xde   :  { %v346_v59 = vmax.f32 %v272_v56, 0.0 }
  0xdf   :  { %v345_v61 = vmax.f32 %v267_v58, 0.0  ;;  %v848_v62 = vpop.f32.mrb[2].mxu0  ;;  %v363_v58 = vld [vmem:[%s1298_s3 + $0x10] sm:$0xff] }
  0xe0   :  { %v282_v0 = vadd.f32 %v848_v62, %v86_v51  ;;  %v276_v1 = vpop.f32.mrb[3].mxu0  ;;  %v367_v62 = vld [vmem:[%s1298_s3 + $0x30] sm:$0xff] }
  0xe1   :  { %v277_v2 = vadd.f32 %v276_v1, %v81_v49  ;;  %v944_v3 = vpack.c.bf16 %v346_v59, %v345_v61  ;;  %v141_v49 = vpop.permute.xlu0 %140  ;;  %v364_v59 = vld [vmem:[%s1298_s3 + $0x18] sm:$0xff]  ;;  %v366_v61 = vld [vmem:[%s1298_s3 + $0x28] sm:$0xff]  ;;  %v385_v1 = vpop.permute.xlu1 %384 }
  0xe2   :  { %v348_v4 = vmax.f32 %v282_v0, 0.0  ;;  %v530_v0 = vld [vmem:[%s1300_s5] sm:$0xff] }
  0xe3   :  { %v347_v5 = vmax.f32 %v277_v2, 0.0  ;;  %v851_v6 = vpop.f32.mrb[4].mxu0  ;;  %945 = vmatprep.subr.bf16.mxu1 %v944_v3  ;;  %927 = vmatprep.mubr.msk.f32.mxu0 %vm558_vm1, %v530_v0 }
  0xe4   :  { %v292_v7 = vadd.f32 %v851_v6, %v96_v53  ;;  %v286_v8 = vpop.f32.mrb[5].mxu0  ;;  %947 = vmatpush3.bf16.msra.mxu1 %v944_v3 }
  0xe5   :  { %v948_v10 = vpack.c.bf16 %v348_v4, %v347_v5  ;;  %v287_v11 = vadd.f32 %v286_v8, %v91_v54  ;;  %v380_v2 = vpop.permute.xlu0 %379  ;;  %v395_v3 = vpop.permute.xlu1 %394 }
  0xe6   :  { %v350_v13 = vmax.f32 %v292_v7, 0.0 }
  0xe7   :  { %v349_v14 = vmax.f32 %v287_v11, 0.0  ;;  %v854_v15 = vpop.f32.mrb[6].mxu0  ;;  %949 = vmatprep.subr.bf16.mxu1 %v948_v10 }
  0xe8   :  { %v302_v16 = vadd.f32 %v854_v15, %v106_v60  ;;  %v296_v17 = vpop.f32.mrb[7].mxu0  ;;  %951 = vmatpush3.bf16.msra.mxu1 %v948_v10  ;;  %v365_v60 = vld [vmem:[%s1298_s3 + $0x20] sm:$0xff] }
  0xe9   :  { %v952_v18 = vpack.c.bf16 %v350_v13, %v349_v14  ;;  %v297_v19 = vadd.f32 %v296_v17, %v101_v63  ;;  %v368_v63 = vld [vmem:[%s1298_s3 + $0x38] sm:$0xff]  ;;  %v390_v5 = vpop.permute.xlu0 %389  ;;  %v405_v14 = vpop.permute.xlu1 %404 }
  0xea   :  { %v352_v20 = vmax.f32 %v302_v16, 0.0 }
  0xeb   :  { %v351_v22 = vmax.f32 %v297_v19, 0.0  ;;  %v857_v23 = vpop.f32.mrb[8].mxu0  ;;  %953 = vmatprep.subr.bf16.mxu1 %v952_v18 }
  0xec   :  { %v312_v25 = vadd.f32 %v857_v23, %v116_v9  ;;  %v306_v26 = vpop.f32.mrb[9].mxu0  ;;  %955 = vmatpush3.bf16.msra.mxu1 %v952_v18 }
  0xed   :  { %v956_v27 = vpack.c.bf16 %v352_v20, %v351_v22  ;;  %v307_v28 = vadd.f32 %v306_v26, %v111_v12  ;;  %v400_v17 = vpop.permute.xlu0 %399  ;;  %v415_v26 = vpop.permute.xlu1 %414 }
  0xee   :  { %v354_v29 = vmax.f32 %v312_v25, 0.0 }
  0xef   :  { %v353_v30 = vmax.f32 %v307_v28, 0.0  ;;  %v860_v31 = vpop.f32.mrb[10].mxu0  ;;  %957 = vmatprep.subr.bf16.mxu1 %v956_v27 }
  0xf0   :  { %v322_v32 = vadd.f32 %v860_v31, %v126_v21  ;;  %v316_v33 = vpop.f32.mrb[11].mxu0  ;;  %959 = vmatpush3.bf16.msra.mxu1 %v956_v27 }
  0xf1   :  { %v960_v35 = vpack.c.bf16 %v354_v29, %v353_v30  ;;  %v317_v36 = vadd.f32 %v316_v33, %v121_v24  ;;  %v410_v29 = vpop.permute.xlu0 %409 }
  0xf2   :  { %v356_v38 = vmax.f32 %v322_v32, 0.0 }
  0xf3   :  { %v355_v39 = vmax.f32 %v317_v36, 0.0  ;;  %v863_v40 = vpop.f32.mrb[12].mxu0  ;;  %961 = vmatprep.subr.bf16.mxu1 %v960_v35 }
  0xf4   :  { %v332_v41 = vadd.f32 %v863_v40, %v136_v34  ;;  %v326_v42 = vpop.f32.mrb[13].mxu0  ;;  %963 = vmatpush3.bf16.msra.mxu1 %v960_v35  ;;  %v1030_v40 = vmov 0.0|0.0  }
  0xf5   :  { %v964_v43 = vpack.c.bf16 %v356_v38, %v355_v39  ;;  %v327_v44 = vadd.f32 %v326_v42, %v131_v37  ;;  %v531_v37 = vld [vmem:[%s1300_s5 + $0x8] sm:$0xff]  ;;  %v532_v38 = vld [vmem:[%s1300_s5 + $0x10] sm:$0xff]  ;;  %v533_v39 = vld [vmem:[%s1300_s5 + $0x18] sm:$0xff]  ;;  %v546_v42 = vpop.permute.xlu1 %545 }
  0xf6   :  { %v358_v45 = vmax.f32 %v332_v41, 0.0  ;;  %v1032_v41 = vmov 0.0  }
  0xf7   :  { %v357_v47 = vmax.f32 %v327_v44, 0.0  ;;  %v866_v48 = vpop.f32.mrb[14].mxu0  ;;  %965 = vmatprep.subr.bf16.mxu1 %v964_v43 }
  0xf8   :  { %v342_v50 = vadd.f32 %v866_v48, %v146_v46  ;;  %v336_v51 = vpop.f32.mrb[15].mxu0  ;;  %967 = vmatpush3.bf16.msra.mxu1 %v964_v43  ;;  %v541_v43 = vpop.permute.xlu0 %540 }
  0xf9   :  { %v968_v52 = vpack.c.bf16 %v358_v45, %v357_v47  ;;  %v337_v53 = vadd.f32 %v336_v51, %v141_v49  ;;  %v556_v49 = vpop.permute.xlu1 %555 }
  0xfa   :  { %v360_v54 = vmax.f32 %v342_v50, 0.0 }
  0xfb   :  { %v359_v55 = vmax.f32 %v337_v53, 0.0  ;;  %969 = vmatprep.subr.bf16.mxu1 %v968_v52 }
  0xfc   :  { %971 = vmatpush3.bf16.msra.mxu1 %v968_v52  ;;  %v551_v52 = vpop.permute.xlu0 %550 }
  0xfd   :  { %v972_v56 = vpack.c.bf16 %v360_v54, %v359_v55 }
  0xff   :  { %973 = vmatprep.subr.bf16.mxu1 %v972_v56 }
 0x100   :  { %975 = vmatpush3.bf16.msra.mxu1 %v972_v56  ;;  %v665_v0 = vpop.permute.xlu0 %664 }
 0x103   :  { %900 = vmatmul.mubr.f32.vlgmr.msra.gmra.mrb[0].mxu1 %v362_v57 }
 0x104   :  { %902 = vmatprep.mubr.f32.mxu1 %v363_v58 }
 0x107   :  { %903 = vmatmul.mubr.f32.gmra.mrb[2].mxu1 %v364_v59 }
 0x108   :  { %905 = vmatprep.mubr.f32.mxu1 %v365_v60  ;;  %v660_v60 = vld [vmem:[%s1302_s7] sm:$0x1] }
 0x10b   :  { %906 = vmatmul.mubr.f32.gmra.mrb[4].mxu1 %v366_v61  ;;  %v667_v61 = vlaneseq }
 0x10c   :  { %908 = vmatprep.mubr.f32.mxu1 %v367_v62 }
 0x10d   :  { %v668_v62 = vshrl.u32 %v667_v61, 7 }
 0x10f   :  { %909 = vmatmul.mubr.f32.gmra.mrb[6].mxu1 %v368_v63  ;;  %v669_v63 = vsub.s32 0, %v668_v62 }
 0x1d6   :  { %v901_v4 = vpop.f32.mrb[0].mxu1 }
 0x1d7   :  { %v489_v6 = vadd.f32 %v901_v4, %v385_v1  ;;  %v483_v7 = vpop.f32.mrb[1].mxu1  ;;  %v670_v1 = vrot.slane %v665_v0, %v669_v63 }
 0x1d8   :  { %v484_v8 = vadd.f32 %v483_v7, %v380_v2 }
 0x1d9   :  { %v523_v9 = vmax.f32 %v489_v6, 0.0 }
 0x1da   :  { %v522_v10 = vmax.f32 %v484_v8, 0.0  ;;  %v904_v11 = vpop.f32.mrb[2].mxu1 }
 0x1db   :  { %v499_v12 = vadd.f32 %v904_v11, %v395_v3  ;;  %v493_v13 = vpop.f32.mrb[3].mxu1 }
 0x1dc   :  { %v976_v15 = vpack.c.bf16 %v523_v9, %v522_v10  ;;  %v494_v16 = vadd.f32 %v493_v13, %v390_v5 }
 0x1dd   :  { %v525_v18 = vmax.f32 %v499_v12, 0.0 }
 0x1de   :  { %v524_v19 = vmax.f32 %v494_v16, 0.0  ;;  %v907_v20 = vpop.f32.mrb[4].mxu1  ;;  %977 = vmatprep.subr.bf16.mxu0 %v976_v15 }
 0x1df   :  { %v509_v21 = vadd.f32 %v907_v20, %v405_v14  ;;  %v503_v22 = vpop.f32.mrb[5].mxu1  ;;  %979 = vmatpush3.bf16.msra.mxu0 %v976_v15 }
 0x1e0   :  { %v980_v23 = vpack.c.bf16 %v525_v18, %v524_v19  ;;  %v504_v24 = vadd.f32 %v503_v22, %v400_v17 }
 0x1e1   :  { %v527_v25 = vmax.f32 %v509_v21, 0.0 }
 0x1e2   :  { %v526_v27 = vmax.f32 %v504_v24, 0.0  ;;  %v910_v28 = vpop.f32.mrb[6].mxu1  ;;  %981 = vmatprep.subr.bf16.mxu0 %v980_v23 }
 0x1e3   :  { %v519_v30 = vadd.f32 %v910_v28, %v415_v26  ;;  %v513_v31 = vpop.f32.mrb[7].mxu1  ;;  %983 = vmatpush3.bf16.msra.mxu0 %v980_v23 }
 0x1e4   :  { %v984_v32 = vpack.c.bf16 %v527_v25, %v526_v27  ;;  %v514_v33 = vadd.f32 %v513_v31, %v410_v29 }
 0x1e5   :  { %v529_v34 = vmax.f32 %v519_v30, 0.0 }
 0x1e6   :  { %v528_v35 = vmax.f32 %v514_v33, 0.0  ;;  %985 = vmatprep.subr.bf16.mxu0 %v984_v32 }
 0x1e7   :  { %987 = vmatpush3.bf16.msra.mxu0 %v984_v32 }
 0x1e8   :  { %v988_v36 = vpack.c.bf16 %v529_v34, %v528_v35 }
 0x1ea   :  { %989 = vmatprep.subr.bf16.mxu0 %v988_v36 }
 0x1eb   :  { %991 = vmatpush3.bf16.msra.mxu0 %v988_v36 }
 0x1ec   :  { %992 = vmatprep.subr.bf16.mxu0 %v1030_v40 }
 0x1ee   :  { %928 = vmatmul.mubr.msk.f32.vlgmr.msra.gmra.mrb[16].mxu0 %vm558_vm1, %v531_v37 }
 0x1ef   :  { %930 = vmatprep.mubr.msk.f32.mxu0 %vm558_vm1, %v532_v38 }
 0x1f2   :  { %931 = vmatmul.mubr.msk.f32.gmra.mrb[18].mxu0 %vm558_vm1, %v533_v39 }
 0x1f3   :  { %941 = vmatprep.mubr.msk.f32.mxu0 %vm1031_vm2, %v1032_v41 }
 0x2c1   :  { %v929_v44 = vpop.f32.mrb[16].mxu0 }
 0x2c2   :  { %v643_v45 = vadd.f32 %v929_v44, %v546_v42  ;;  %v637_v46 = vpop.f32.mrb[17].mxu0 }
 0x2c3   :  { %v638_v47 = vadd.f32 %v637_v46, %v541_v43 }
 0x2c4   :  { %v657_v48 = vmax.f32 %v643_v45, 0.0 }
 0x2c5   :  { %v656_v50 = vmax.f32 %v638_v47, 0.0  ;;  %v932_v51 = vpop.f32.mrb[18].mxu0 }
 0x2c6   :  { %v653_v53 = vadd.f32 %v932_v51, %v556_v49  ;;  %v647_v54 = vpop.f32.mrb[19].mxu0 }
 0x2c7   :  { %v993_v55 = vpack.c.bf16 %v657_v48, %v656_v50  ;;  %v648_v56 = vadd.f32 %v647_v54, %v551_v52 }
 0x2c8   :  { %v659_v57 = vmax.f32 %v653_v53, 0.0 }
 0x2c9   :  { %v658_v58 = vmax.f32 %v648_v56, 0.0  ;;  %994 = vmatpush3.bf16.msra.mxu0 %v993_v55 }
 0x2ca   :  { %995 = vmatprep.subr.bf16.mxu0 %v1030_v40 }
 0x2cb   :  { %v996_v59 = vpack.c.bf16 %v659_v57, %v658_v58 }
 0x2cd   :  { %997 = vmatpush3.bf16.msra.mxu0 %v996_v59 }
 0x2d0   :  { %942 = vmatmul.mubr.msk.f32.vlgmr.msra.gmra.mrb[20].mxu0 %vm671_vm3, %v660_v60 }
 0x3a3   :  { %v741_v2 = vpop.f32.mrb[20].mxu0 }
 0x3a4   :  { %v742_v3 = vadd.f32 %v741_v2, %v670_v1  ;;  %v943_v4 = vpop.f32.mrb[21].mxu0 }
 0x3a6   :  { %746 = vst.msk [vmem:[#allocation3] sm:$0x1] %vm745_vm4, %v742_v3 }
 0x3a7   :  { %1016 = shalt.err (!%p1013_p4)
}
 0x3a8   :  { %s1017_s6 = scalar_lea.hbm %s1304_s9, 16 }
 0x3a9   :  { %p1018_p5 = scmp.ne.s32.totalorder %s1304_s9, %s1017_s6  ;;  %p1021_p6 = scmp.lt.u32.totalorder %s1017_s6, %s1304_s9 }
 0x3ab   :  { %p1023_p7 = pnand %p1021_p6, %p1018_p5 }
 0x3ad   :  { %1026 = shalt.err (!%p1023_p7)
}
 0x3ae   :  { %756 = dma.vmem_to_hbm [thread:$0]  %s754_s26, 16, %s1304_s9, [#allocation4]  }
 0x3af   :  { %1027 = dma.done.wait [#allocation4], 16  }
 0x3b0   :  { %1028 = vsyncadd [#allocation4], 4294967280 }
 0x3b1   :  { %760 = vsyncpa [#allocation4], 1 }

</bundles_post_ra>
